<compile_context>
chip_gen: v7x
topology: tpu7x:2x2x1
jax: 0.10.0
libtpu: 0.0.40
codegen_flags: <defaults>
</compile_context>

<pallas_src>
import functools

import jax
import jax.numpy as jnp
from jax.experimental import pallas as pl
from jax.experimental.pallas import tpu as pltpu


def _round_up(x, m):
    return ((x + m - 1) // m) * m


def _divisors_desc(n):
    return [d for d in range(n, 0, -1) if n % d == 0]


def _im2col_kernel(x_ref, g_ref, b_ref, o_ref, p_ref, *, c_in, wp, l_pad):
    """Small-Cin path: stage the 9 phase-taps into persistent VMEM scratch
    (no concatenate temporary), then ONE MXU matmul with K = 9*Cin."""
    xs = x_ref[0, 0]                                   # (Cin, FP_pad): one load
    for r in range(3):
        for c in range(3):
            t = r * 3 + c
            s = r * wp + c                             # static lane offset
            p_ref[t * c_in:(t + 1) * c_in, :] = xs[:, s:s + l_pad]
    acc = jnp.dot(g_ref[...], p_ref[...], preferred_element_type=jnp.float32)
    o_ref[0, 0] = (acc + b_ref[...]).astype(o_ref.dtype)   # f32 epilogue


def _per_tap_kernel(x_ref, g_ref, b_ref, o_ref, *, c_in, wp, l_pad):
    """Large-Cin path: never materialize the (9*Cin, L) im2col slab; accumulate
    nine K=Cin matmuls (K already saturates the MXU contracting dim)."""
    xs = x_ref[0, 0]                                   # (Cin, FP_pad)
    gm = g_ref[...]                                    # (RB, 9*Cin), resident
    acc = jnp.zeros((gm.shape[0], l_pad), jnp.float32)
    for r in range(3):
        for c in range(3):
            t = r * 3 + c
            s = r * wp + c
            acc = acc + jnp.dot(gm[:, t * c_in:(t + 1) * c_in],
                                xs[:, s:s + l_pad],
                                preferred_element_type=jnp.float32)
    o_ref[0, 0] = (acc + b_ref[...]).astype(o_ref.dtype)   # f32 epilogue


def _vmem_estimate(c_in, rb, ht, wp, xbytes, use_im2col):
    """Honest per-step footprint: pipelined blocks are double-buffered,
    compute temporaries (taps, f32 accumulator) are not."""
    l_pad = _round_up(ht * wp, 128)
    fp_pad = _round_up(l_pad + 3 * wp, 128)
    in_blk = c_in * fp_pad * xbytes
    w_blk = rb * 9 * c_in * xbytes
    b_blk = rb * 4
    out_blk = rb * l_pad * xbytes
    pipelined = 2 * (in_blk + w_blk + b_blk + out_blk)
    acc_tmp = rb * l_pad * 4
    tap_tmp = (9 if use_im2col else 2) * c_in * l_pad * xbytes
    return pipelined + acc_tmp + tap_tmp


def upsample_forward(x_nchw, weight_oihw=None, bias=None, use_conv=True, *,
                     h_tile=None, im2col_max_cin=32, io_dtype=None):
    """Equivalent of Upsample(channels, use_conv, dims=2).forward (NCHW)."""
    N, C, Hi, Wi = x_nchw.shape

    if not use_conv:
        # nearest-neighbour 2x upsample only: pure data movement (glue).
        return jnp.repeat(jnp.repeat(x_nchw, 2, axis=2), 2, axis=3)

    Cout = weight_oihw.shape[0]
    assert weight_oihw.shape == (Cout, C, 3, 3)

    out_dtype = x_nchw.dtype
    store_dtype = jnp.dtype(io_dtype) if io_dtype is not None else jnp.dtype(out_dtype)
    xbytes = store_dtype.itemsize

    Wp = Wi + 2                               # padded width (1 left, 1 right)

    # ---- chip-aware VMEM cap -------------------------------------------------
    try:
        vmem_cap = int(pltpu.get_tpu_info().vmem_capacity_bytes)
    except Exception:
        vmem_cap = 128 * 1024 * 1024
    cap = (36 << 20) if vmem_cap <= (64 << 20) else (56 << 20)

    # ---- output-channel blocking: don't split small Cout ---------------------
    rows4 = 4 * Cout
    if rows4 <= 256:
        RB = rows4
    else:
        RB = 256
        while rows4 % RB:
            RB //= 2
    n_cblk = rows4 // RB
    use_im2col = (C <= im2col_max_cin)

    # ---- H-tile selection (2-row halo per tile, +1 junk row for flatten) -----
    if h_tile is None:
        Ht = 1
        for d in _divisors_desc(Hi):
            if _vmem_estimate(C, RB, d, Wp, xbytes, use_im2col) <= cap // 2:
                Ht = d
                break
    else:
        assert Hi % h_tile == 0, "h_tile must divide the input height"
        Ht = h_tile
    n_ht = Hi // Ht

    L = Ht * Wp                               # valid output lanes per tile
    L_pad = _round_up(L, 128)                 # 128-aligned, unmasked stores
    FP_pad = _round_up(L_pad + 3 * Wp, 128)   # slab lanes (covers max tap shift)

    # ---- fuse nearest-2x upsample into the 3x3 conv weights (wrapper, tiny) --
    # M3[ph, r, dh] == 1 iff conv tap dh of output row 2*io+ph reads padded
    # original row io + r.  Same combination matrix for columns.
    M3 = jnp.array([[[1., 0., 0.], [0., 1., 1.], [0., 0., 0.]],
                    [[0., 0., 0.], [1., 1., 0.], [0., 0., 1.]]], jnp.float32)
    w = weight_oihw.astype(jnp.float32)                      # (o, i, dh, dv)
    G = jnp.einsum('prh,qcv,oihv->opqrci', M3, M3, w)        # (Cout,2,2,3,3,Cin)
    G = G.reshape(rows4, 9 * C).astype(store_dtype)          # rows=(co,ph,pw) cols=(r,c,ci)
    bvec = jnp.repeat(bias.astype(jnp.float32), 4).reshape(rows4, 1)

    # ---- input: pad once, gather overlapping halo'd H-tile slabs -------------
    xpad = jnp.pad(x_nchw, ((0, 0), (0, 0), (1, 2), (1, 1)))  # (N,C,Hi+3,Wp)
    row_idx = (jnp.arange(n_ht) * Ht)[:, None] + jnp.arange(Ht + 3)[None, :]
    slabs = xpad[:, :, row_idx, :]                            # (N,C,n_ht,Ht+3,Wp)
    slabs = jnp.transpose(slabs, (0, 2, 1, 3, 4)).reshape(N, n_ht, C, (Ht + 3) * Wp)
    slabs = jnp.pad(slabs, ((0, 0), (0, 0), (0, 0), (0, FP_pad - (Ht + 3) * Wp)))
    slabs = slabs.astype(store_dtype)

    # ---- honest VMEM limit (clamped chip-aware) -------------------------------
    est = _vmem_estimate(C, RB, Ht, Wp, xbytes, use_im2col)
    vmem_limit = int(min(max(int(est * 1.3) + (2 << 20), 16 << 20), cap))

    if use_im2col:
        kern = functools.partial(_im2col_kernel, c_in=C, wp=Wp, l_pad=L_pad)
        scratch = [pltpu.VMEM((9 * C, L_pad), store_dtype)]
    else:
        kern = functools.partial(_per_tap_kernel, c_in=C, wp=Wp, l_pad=L_pad)
        scratch = []

    # Grid: cout-block OUTERMOST so the fused weight / bias block is DMA'd once
    # and stays resident across all images and H tiles (copy elision).
    out_raw = pl.pallas_call(
        kern,
        out_shape=jax.ShapeDtypeStruct((N, n_ht, rows4, L_pad), out_dtype),
        grid_spec=pltpu.PrefetchScalarGridSpec(
            num_scalar_prefetch=0,
            grid=(n_cblk, N, n_ht),
            in_specs=[
                pl.BlockSpec((1, 1, C, FP_pad), lambda g, n, h: (n, h, 0, 0)),
                pl.BlockSpec((RB, 9 * C), lambda g, n, h: (g, 0)),
                pl.BlockSpec((RB, 1), lambda g, n, h: (g, 0)),
            ],
            out_specs=pl.BlockSpec((1, 1, RB, L_pad), lambda g, n, h: (n, h, g, 0)),
            scratch_shapes=scratch,
        ),
        compiler_params=pltpu.CompilerParams(
            dimension_semantics=("parallel", "parallel", "parallel"),
            vmem_limit_bytes=vmem_limit),
    )(slabs, G, bvec)

    # ---- un-interleave the 4 phases + H tiles (rides the required transpose) --
    o = out_raw[..., :L].reshape(N, n_ht, Cout, 2, 2, Ht, Wp)[..., :Wi]
    o = jnp.transpose(o, (0, 2, 1, 5, 3, 6, 4))   # (n, co, h, it, ph, jo, pw)
    return o.reshape(N, Cout, 2 * Hi, 2 * Wi)


if __name__ == "__main__":
    # Upsample(channels=4, use_conv=True, dims=2, out_channels=4, padding=1)
    channels, out_channels = 4, 4
    N, Hi, Wi = 2, 16, 16

    key = jax.random.PRNGKey(0)
    kx, kw, kb = jax.random.split(key, 3)

    x = jax.random.normal(kx, (N, channels, Hi, Wi), dtype=jnp.float32)
    fan_in = channels * 3 * 3
    weight = jax.random.normal(kw, (out_channels, channels, 3, 3),
                               dtype=jnp.float32) / jnp.sqrt(fan_in)
    bias = jax.random.normal(kb, (out_channels,), dtype=jnp.float32) * 0.01

    # reference (plain JAX): nearest 2x upsample + conv2d(pad=1)
    up_ref = jnp.repeat(jnp.repeat(x, 2, axis=2), 2, axis=3)
    ref = jax.lax.conv_general_dilated(
        up_ref, weight, window_strides=(1, 1), padding=((1, 1), (1, 1)),
        dimension_numbers=("NCHW", "OIHW", "NCHW"),
    ) + bias[None, :, None, None]

    # 1) im2col-scratch path, 2 H tiles (exercises halo logic)
    y1 = upsample_forward(x, weight, bias, use_conv=True, h_tile=8)
    # 2) per-tap accumulation path (production big-Cin path), auto H tile
    y2 = upsample_forward(x, weight, bias, use_conv=True, im2col_max_cin=0)
    # 3) bf16 storage (v6e/v7x option), f32 accumulation, per-tap path
    y3 = upsample_forward(x, weight, bias, use_conv=True, h_tile=8,
                          im2col_max_cin=0, io_dtype=jnp.bfloat16)
    # 4) no-conv path (nearest 2x only)
    y4 = upsample_forward(x, use_conv=False)
    jax.block_until_ready((y1, y2, y3, y4))

    assert y1.shape == (N, out_channels, 2 * Hi, 2 * Wi)
    assert y2.shape == (N, out_channels, 2 * Hi, 2 * Wi)
    assert jnp.allclose(y1, ref, atol=2e-4, rtol=2e-4)
    assert jnp.allclose(y2, ref, atol=2e-4, rtol=2e-4)
    assert jnp.allclose(y3.astype(jnp.float32), ref, atol=6e-2, rtol=6e-2)
    assert y4.shape == (N, channels, 2 * Hi, 2 * Wi)
    assert jnp.allclose(y4, up_ref)
    print("KERNEL_OK")
</pallas_src>

<mosaic_0001>
module attributes {stable_mosaic.version = 11 : i64} {
  func.func @_im2col_kernel(%arg0: i32, %arg1: i32, %arg2: i32, %arg3: memref<1x1x4x384xf32, #tpu.memory_space<vmem>>, %arg4: memref<16x36xf32, #tpu.memory_space<vmem>>, %arg5: memref<16x1xf32, #tpu.memory_space<vmem>>, %arg6: memref<1x1x16x256xf32, #tpu.memory_space<vmem>>, %arg7: memref<36x256xf32, #tpu.memory_space<vmem>>) attributes {dimension_semantics = [#tpu.dimension_semantics<parallel>, #tpu.dimension_semantics<parallel>, #tpu.dimension_semantics<parallel>], iteration_bounds = array<i64: 1, 2, 2>, scalar_prefetch = 0 : i64, scratch_operands = 1 : i64, tpu.core_type = #tpu.core_type<tc>, window_params = [{transform_indices = @transform_0, window_bounds = array<i64: 1, 1, 4, 384>}, {transform_indices = @transform_1, window_bounds = array<i64: 16, 36>}, {transform_indices = @transform_2, window_bounds = array<i64: 16, 1>}, {transform_indices = @transform_3, window_bounds = array<i64: 1, 1, 16, 256>}]} {
    %c0 = arith.constant 0 : index
    %c0_0 = arith.constant 0 : index
    %c0_1 = arith.constant 0 : index
    %c0_2 = arith.constant 0 : index
    %0 = vector.load %arg3[%c0, %c0_0, %c0_1, %c0_2] : memref<1x1x4x384xf32, #tpu.memory_space<vmem>>, vector<1x1x4x384xf32>
    %1 = vector.shape_cast %0 : vector<1x1x4x384xf32> to vector<4x384xf32>
    %2 = vector.extract_strided_slice %1 {offsets = [0, 0], sizes = [4, 256], strides = [1, 1]} : vector<4x384xf32> to vector<4x256xf32>
    %c0_3 = arith.constant 0 : index
    %c0_4 = arith.constant 0 : index
    %3 = vector.load %arg7[%c0_3, %c0_4] : memref<36x256xf32, #tpu.memory_space<vmem>>, vector<4x256xf32>
    tpu.vector_store %arg7[%c0_3, %c0_4], %2 {strides = array<i32>} : memref<36x256xf32, #tpu.memory_space<vmem>>, vector<4x256xf32>,
    %4 = vector.extract_strided_slice %1 {offsets = [0, 1], sizes = [4, 256], strides = [1, 1]} : vector<4x384xf32> to vector<4x256xf32>
    %c4 = arith.constant 4 : index
    %c0_5 = arith.constant 0 : index
    %5 = vector.load %arg7[%c4, %c0_5] : memref<36x256xf32, #tpu.memory_space<vmem>>, vector<4x256xf32>
    tpu.vector_store %arg7[%c4, %c0_5], %4 {strides = array<i32>} : memref<36x256xf32, #tpu.memory_space<vmem>>, vector<4x256xf32>,
    %6 = vector.extract_strided_slice %1 {offsets = [0, 2], sizes = [4, 256], strides = [1, 1]} : vector<4x384xf32> to vector<4x256xf32>
    %c8 = arith.constant 8 : index
    %c0_6 = arith.constant 0 : index
    %7 = vector.load %arg7[%c8, %c0_6] : memref<36x256xf32, #tpu.memory_space<vmem>>, vector<4x256xf32>
    tpu.vector_store %arg7[%c8, %c0_6], %6 {strides = array<i32>} : memref<36x256xf32, #tpu.memory_space<vmem>>, vector<4x256xf32>,
    %8 = vector.extract_strided_slice %1 {offsets = [0, 18], sizes = [4, 256], strides = [1, 1]} : vector<4x384xf32> to vector<4x256xf32>
    %c12 = arith.constant 12 : index
    %c0_7 = arith.constant 0 : index
    %9 = vector.load %arg7[%c12, %c0_7] : memref<36x256xf32, #tpu.memory_space<vmem>>, vector<4x256xf32>
    tpu.vector_store %arg7[%c12, %c0_7], %8 {strides = array<i32>} : memref<36x256xf32, #tpu.memory_space<vmem>>, vector<4x256xf32>,
    %10 = vector.extract_strided_slice %1 {offsets = [0, 19], sizes = [4, 256], strides = [1, 1]} : vector<4x384xf32> to vector<4x256xf32>
    %c16 = arith.constant 16 : index
    %c0_8 = arith.constant 0 : index
    %11 = vector.load %arg7[%c16, %c0_8] : memref<36x256xf32, #tpu.memory_space<vmem>>, vector<4x256xf32>
    tpu.vector_store %arg7[%c16, %c0_8], %10 {strides = array<i32>} : memref<36x256xf32, #tpu.memory_space<vmem>>, vector<4x256xf32>,
    %12 = vector.extract_strided_slice %1 {offsets = [0, 20], sizes = [4, 256], strides = [1, 1]} : vector<4x384xf32> to vector<4x256xf32>
    %c20 = arith.constant 20 : index
    %c0_9 = arith.constant 0 : index
    %13 = vector.load %arg7[%c20, %c0_9] : memref<36x256xf32, #tpu.memory_space<vmem>>, vector<4x256xf32>
    tpu.vector_store %arg7[%c20, %c0_9], %12 {strides = array<i32>} : memref<36x256xf32, #tpu.memory_space<vmem>>, vector<4x256xf32>,
    %14 = vector.extract_strided_slice %1 {offsets = [0, 36], sizes = [4, 256], strides = [1, 1]} : vector<4x384xf32> to vector<4x256xf32>
    %c24 = arith.constant 24 : index
    %c0_10 = arith.constant 0 : index
    %15 = vector.load %arg7[%c24, %c0_10] : memref<36x256xf32, #tpu.memory_space<vmem>>, vector<4x256xf32>
    tpu.vector_store %arg7[%c24, %c0_10], %14 {strides = array<i32>} : memref<36x256xf32, #tpu.memory_space<vmem>>, vector<4x256xf32>,
    %16 = vector.extract_strided_slice %1 {offsets = [0, 37], sizes = [4, 256], strides = [1, 1]} : vector<4x384xf32> to vector<4x256xf32>
    %c28 = arith.constant 28 : index
    %c0_11 = arith.constant 0 : index
    %17 = vector.load %arg7[%c28, %c0_11] : memref<36x256xf32, #tpu.memory_space<vmem>>, vector<4x256xf32>
    tpu.vector_store %arg7[%c28, %c0_11], %16 {strides = array<i32>} : memref<36x256xf32, #tpu.memory_space<vmem>>, vector<4x256xf32>,
    %18 = vector.extract_strided_slice %1 {offsets = [0, 38], sizes = [4, 256], strides = [1, 1]} : vector<4x384xf32> to vector<4x256xf32>
    %c32 = arith.constant 32 : index
    %c0_12 = arith.constant 0 : index
    %19 = vector.load %arg7[%c32, %c0_12] : memref<36x256xf32, #tpu.memory_space<vmem>>, vector<4x256xf32>
    tpu.vector_store %arg7[%c32, %c0_12], %18 {strides = array<i32>} : memref<36x256xf32, #tpu.memory_space<vmem>>, vector<4x256xf32>,
    %c0_13 = arith.constant 0 : index
    %c0_14 = arith.constant 0 : index
    %20 = vector.load %arg4[%c0_13, %c0_14] : memref<16x36xf32, #tpu.memory_space<vmem>>, vector<16x36xf32>
    %c0_15 = arith.constant 0 : index
    %c0_16 = arith.constant 0 : index
    %21 = vector.load %arg7[%c0_15, %c0_16] : memref<36x256xf32, #tpu.memory_space<vmem>>, vector<36x256xf32>
    %cst = arith.constant dense<0.000000e+00> : vector<16x256xf32>
    %22 = tpu.matmul %20, %21, %cst {dimension_numbers = #tpu.dot_dimension_numbers<[1], [0], [0], [1], [0, 0, 1, 1], [], []>} : vector<16x36xf32>, vector<36x256xf32>, vector<16x256xf32> -> vector<16x256xf32>
    %c0_17 = arith.constant 0 : index
    %c0_18 = arith.constant 0 : index
    %23 = vector.load %arg5[%c0_17, %c0_18] : memref<16x1xf32, #tpu.memory_space<vmem>>, vector<16x1xf32>
    %24 = vector.broadcast %23 : vector<16x1xf32> to vector<16x256xf32>
    %25 = arith.addf %22, %24 : vector<16x256xf32>
    %c0_19 = arith.constant 0 : index
    %c0_20 = arith.constant 0 : index
    %c0_21 = arith.constant 0 : index
    %c0_22 = arith.constant 0 : index
    %26 = vector.load %arg6[%c0_19, %c0_20, %c0_21, %c0_22] : memref<1x1x16x256xf32, #tpu.memory_space<vmem>>, vector<1x1x16x256xf32>
    %27 = vector.shape_cast %26 : vector<1x1x16x256xf32> to vector<16x256xf32>
    %28 = vector.shape_cast %25 : vector<16x256xf32> to vector<1x1x16x256xf32>
    tpu.vector_store %arg6[%c0_19, %c0_20, %c0_21, %c0_22], %28 {strides = array<i32>} : memref<1x1x16x256xf32, #tpu.memory_space<vmem>>, vector<1x1x16x256xf32>,
    return
  }
  func.func @transform_0(%arg0: i32, %arg1: i32, %arg2: i32) -> (i32, i32, i32, i32) {
    %c0_i32 = arith.constant 0 : i32
    %c0_i32_0 = arith.constant 0 : i32
    %c0_i32_1 = arith.constant 0 : i32
    return %arg1, %arg2, %c0_i32, %c0_i32_0 : i32, i32, i32, i32
  }
  func.func @transform_1(%arg0: i32, %arg1: i32, %arg2: i32) -> (i32, i32) {
    %c0_i32 = arith.constant 0 : i32
    %c0_i32_0 = arith.constant 0 : i32
    return %arg0, %c0_i32 : i32, i32
  }
  func.func @transform_2(%arg0: i32, %arg1: i32, %arg2: i32) -> (i32, i32) {
    %c0_i32 = arith.constant 0 : i32
    %c0_i32_0 = arith.constant 0 : i32
    return %arg0, %c0_i32 : i32, i32
  }
  func.func @transform_3(%arg0: i32, %arg1: i32, %arg2: i32) -> (i32, i32, i32, i32) {
    %c0_i32 = arith.constant 0 : i32
    %c0_i32_0 = arith.constant 0 : i32
    return %arg1, %arg2, %arg0, %c0_i32 : i32, i32, i32, i32
  }
}

</mosaic_0001>

<bundles_post_ra>
// kernel: tpu_custom_call.1
= control target key start
LH: loop header
LB: loop body
LE: loop exit
PB: predicated region body
PF: predicated region fallthrough
CT: control target
= control target key end

     0   :  { %8 = vsyncpa [#allocation4], 0  ;;  %s1149_s0 = inlined_call_operand.hbm [shape: f32[2,2,4,384], index: 0, kind: input, shape index: {}]   ;;  %s1150_s1 = inlined_call_operand.vmem [shape: f32[16,36], index: 1, kind: input, shape index: {}]   ;;  %s1151_s2 = inlined_call_operand.vmem [shape: f32[16,1], index: 2, kind: input, shape index: {}]   ;;  %s1152_s3 = inlined_call_operand.hbm [shape: f32[2,2,16,256], index: 3, kind: output, shape index: {}]  }
   0x1   :  { %10 = vsyncpa [#allocation4 + $0x1], 0 }
   0x2   :  { %11 = vsyncpa [#allocation5], 0 }
   0x3   :  { %13 = vsyncpa [#allocation5 + $0x1], 0  ;;  %s932_s12 = smov 0   ;;  %s934_s13 = smov 0  }
   0x4   :  { %s936_s14 = smov 0   ;;  %s938_s15 = smov 0  }
   0x5   :  { %s940_s16 = smov 0   ;;  %s942_s17 = smov 0  }
   0x6   :  { %s944_s18 = smov 0   ;;  %s946_s19 = smov 0  }
   0x7 LB: > { %s636_s20 = sadd.s32 4294967295, %s896_s19   ;;  %s637_s21 = sadd.s32 4294967294, %s896_s19   ;;  %s896_s19 = sphi %s946_s19, %s19_s19   ;;  %s892_s18 = sphi %s944_s18, %s1172_s18   ;;  %s888_s17 = sphi %s942_s17, %s1171_s17   ;;  %s884_s16 = sphi %s940_s16, %s1170_s16   ;;  %s880_s15 = sphi %s938_s15, %s1169_s15   ;;  %s876_s14 = sphi %s936_s14, %s1168_s14   ;;  %s872_s13 = sphi %s934_s13, %s1167_s13   ;;  %s868_s12 = sphi %s932_s12, %s1166_s12  }
   0x8   : > { %s31_s22 = sadd.s32 1, %s888_s17  ;;  %s34_s23 = sadd.s32 1, %s892_s18 }
   0x9   : > { %p32_p0 = scmp.ge.s32.totalorder %s31_s22, 2  ;;  %s47_s24 = sadd.s32 1, %s876_s14 }
   0xa   : > { %p54_p1 = scmp.ne.s32.totalorder %s876_s14, %s872_s13  ;;  %p55_p2 = scmp.eq.s32.totalorder %s896_s19, 0 }
   0xb   : > { %s1174_s22 = smov (%p32_p0, %s31_s22), 0  ;;  %s1176_s23 = smov (!%p32_p0, %s34_s23), %s892_s18 }
   0xc   : > { %s43_s25 = ssub.s32 %s888_s17, %s1174_s22  ;;  %p985_p3 = por %p55_p2, %p54_p1 }
   0xd   : > { %p36_p4 = scmp.ge.s32.totalorder %s1176_s23, 2  ;;  %p60_p5 = scmp.ne.s32.totalorder %s872_s13, %s868_s12 }
   0xe   : > { %p61_p6 = scmp.eq.s32.totalorder %s636_s20, 0  ;;  %p140_p7 = scmp.eq.s32.totalorder %s636_s20, 3 }
   0xf   : > { %s1178_s23 = smov (%p36_p4, %s1176_s23), 0  ;;  %p146_p10 = scmp.eq.s32.totalorder %s637_s21, 3 }
  0x10   : > { %1156 = sst [smem:[#allocation9_spill]] %s1178_s23  ;;  %p993_p8 = por %p61_p6, %p60_p5 }
  0x11   : > { %p997_p9 = por %p140_p7, %p54_p1  ;;  %s42_s29 = ssub.s32 %s892_s18, %s1178_s23 }
  0x12   : > { %s44_s30 = sor.u32 %s43_s25, %s42_s29  ;;  %p1003_p12 = por %p146_p10, %p60_p5 }
  0x13   : > { %s1158_s28 = scalar_select %p997_p9, 1, 0 }
  0x14   : > { %p45_p11 = scmp.eq.s32.totalorder %s44_s30, 0  ;;  %p685_p13 = scmp.lt.s32.totalorder %s896_s19, 4 }
  0x15   : > { %s1159_s4 = scalar_select %p1003_p12, 1, 0 }
  0x16   : > { %s184_s5 = sand.u32 1, %s876_s14   ;;  %s670_s8 = smul.u32 3, %s888_s17 }
  0x17   : > { %s1010_s6 = scalar_select %p45_p11, %s876_s14, %s47_s24  }
  0x18   : > { %s669_s7 = smul.u32 12, %s184_s5  ;;  %p1015_p0 = pnand %p685_p13, %p985_p3 }
  0x19   : > { %s671_s10 = smul.u32 6, %s892_s18  ;;  %s185_s26 = scalar_lea.sflag [#allocation4], %s184_s5 }
  0x1a   : > { %s188_s11 = scalar_lea.vmem [#allocation3], %s669_s7  ;;  %p770_p4 = pneg %p1015_p0 }
  0x1b   : > { %s198_s20 = sshll.u32 %s188_s11, 4  ;;  %s194_s21 = sadd.s32 %s671_s10, %s670_s8  ;;  %s1020_s20 = int_to_ptr.vmem [resolvable:$true] %s198_s20 }
  0x1c   : > { %s642_s25 = sshll.u32 %s194_s21, 6  ;;  %s773_s10 = scalar_lea.hbm %s1149_s0, 768 }
  0x1d   : > { %s1026_s30 = scalar_lea.hbm %s1149_s0, %s642_s25 }
  0x1e   : > { %s768_s23 = scalar_lea.hbm %s1026_s30, 192  ;;  %p774_p7 = scmp.lt.u32.totalorder %s1026_s30, %s1149_s0 }
  0x1f   : > { %p769_p3 = scmp.ne.s32.totalorder %s1026_s30, %s768_s23  ;;  %p775_p10 = scmp.lt.u32.totalorder %s773_s10, %s768_s23 }
  0x20   : > { %p777_p13 = scmp.lt.u32.totalorder %s768_s23, %s1026_s30 }
  0x21   : > { %p771_p5 = pnand %p770_p4, %p769_p3  ;;  %p776_p11 = por %p775_p10, %p774_p7 }
  0x23   : > { %p772_p6 = pneg %p771_p5  ;;  %p778_p1 = por %p777_p13, %p776_p11 }
  0x25   : > { %p779_p2 = pnand %p778_p1, %p772_p6 }
  0x27   : > { %782 = shalt.err (!%p779_p2)
}
  0x28   : > { %s783_s5 = scalar_lea.vmem %s1020_s20, 192  ;;  %s898_s25 = smov [#allocation3]  }
  0x29   : > { %p784_p3 = scmp.ne.s32.totalorder %s1020_s20, %s783_s5  ;;  %s788_s29 = sshll.u32 %s898_s25, 4  ;;  %s789_s29 = int_to_ptr.vmem [resolvable:$false] %s788_s29 }
  0x2a   : > { %s790_s24 = scalar_lea.vmem %s789_s29, 384  ;;  %p791_p9 = scmp.lt.s32.totalorder %s1020_s20, %s789_s29 }
  0x2b   : > { %p786_p5 = pnand %p784_p3, %p770_p4  ;;  %p792_p7 = scmp.lt.s32.totalorder %s790_s24, %s783_s5 }
  0x2d   : > { %p787_p12 = pneg %p786_p5  ;;  %p793_p10 = por %p792_p7, %p791_p9 }
  0x2f   : > { %p794_p11 = pnand %p793_p10, %p787_p12 }
  0x31   : > { %797 = shalt.err (!%p794_p11)
}
  0x32   : > { %680 = dma.hbm_to_vmem [thread:$0]  (!%p1015_p0), %s1026_s30, 192, %s1020_s20, %s185_s26  }
  0x33   : > { %p1161_p1 = scmp.lt.s32.totalorder %s896_s19, 5  ;;  %p1162_p2 = scmp.ge.s32.totalorder %s896_s19, 1 }
  0x35   : > { %p204_p4 = pnand %p1162_p2, %p1161_p1 }
  0x36   : > { %s1059_s23 = sand.u32 (!%p204_p4), 1, %s872_s13  }
  0x37   : > { %207 = sbr.rel (%p204_p4) target bundleno = 465 (0x1d1), region = 32  ;;  %s210_s8 = scalar_lea.sflag (!%p204_p4), [#allocation4], %s1059_s23 }
  0x38   : > { %s672_s7 = smul.u32 (!%p204_p4), 12, %s1059_s23 }
  0x3a   : > { %s213_s10 = scalar_lea.vmem (!%p204_p4), [#allocation3], %s672_s7 }
  0x3e   : > { %859 = dma.done.wait (%p993_p8), %s210_s8, 192  }
  0x3f   : > { %861 = vsyncadd (%p993_p8), %s210_s8, 4294967104  ;;  %v260_v0 = vld [vmem:[%s213_s10 + $0x8] sm:$0xf]  ;;  %v259_v1 = vld [vmem:[%s213_s10] sm:$0xff]  ;;  %s899_s9 = smov 126   ;;  %s900_s20 = smov 127  }
  0x40   : > { %286 = vrot.lane.b32.xlu1 %v260_v0, %s899_s9  ;;  %271 = vrot.lane.b32.xlu0 %v259_v1, %s900_s20  ;;  %264 = vst [vmem:[#allocation2] sm:$0xf] %v259_v1  ;;  %v262_v2 = vcombine.high %v259_v1, %v259_v1  ;;  %s901_s30 = smov 110   ;;  %v268_v3 = vcombine.low %v260_v0, %v260_v0  ;;  %s902_s27 = smov 109   ;;  %v907_v5 = vmov 0.0   ;;  %v908_v6 = vmov 0  }
  0x41   : > { %v267_v4 = vcombine.low %v259_v1, %v259_v1  ;;  %s903_s26 = smov 108   ;;  %s904_s11 = smov 92   ;;  %475 = vmatprep.mubr.f32.mxu0 %v907_v5  ;;  %481 = vmatprep.mubr.f32.mxu1 %v907_v5  ;;  %v385_v7 = vld [vmem:[%s1151_s2] sm:$0xff]  ;;  %v386_v8 = vld [vmem:[%s1151_s2 + $0x8] sm:$0xff]  ;;  %vm288_vm0 = vcmask 1031168   ;;  %vm275_vm1 = vcmask 1039360  }
  0x42   : > { %265 = vst [vmem:[#allocation2 + $0x8] sm:$0xf] %v262_v2  ;;  %s905_s21 = smov 91   ;;  %s906_s5 = smov 90   ;;  %764 = vset.pattern.permute.xlu1 %v908_v6  ;;  %763 = vset.pattern.permute.xlu0 %v908_v6  ;;  %vm301_vm2 = vcmask 900096   ;;  %vm314_vm3 = vcmask 891904  }
  0x43   : > { %vm327_vm4 = vcmask 883712   ;;  %vm340_vm5 = vcmask 752640   ;;  %vm353_vm6 = vcmask 744448   ;;  %vm366_vm7 = vcmask 736256   ;;  %v373_v62 = vld [vmem:[%s1150_s1] sm:$0xff]  ;;  %v374_v63 = vld [vmem:[%s1150_s1 + $0x8] sm:$0xff] }
  0x44   : > { %297 = vrot.lane.b32.xlu0 %v259_v1, %s901_s30  ;;  %284 = vrot.lane.b32.xlu1 %v262_v2, %s899_s9  ;;  %vm404_vm8 = vcmask 1043456   ;;  %vm397_vm9 = vcmask 293888   ;;  %s493_s24 = scalar_lea.sflag [#allocation5], %s1059_s23  ;;  %p1163_p9 = scmp.ne.s32.totalorder %s1158_s28, 0 }
  0x45   : > { %s909_s8 = smov [#allocation6]  }
  0x46   : > { %s802_s10 = sshll.u32 %s909_s8, 4  ;;  %s803_s10 = int_to_ptr.vmem [resolvable:$false] %s802_s10 }
  0x48   : > { %273 = vrot.lane.b32.xlu0 %v268_v3, %s900_s20  ;;  %299 = vrot.lane.b32.xlu1 %v268_v3, %s901_s30 }
  0x4c   : > { %269 = vrot.lane.b32.xlu0 %v267_v4, %s900_s20  ;;  %282 = vrot.lane.b32.xlu1 %v259_v1, %s899_s9  ;;  %s804_s9 = scalar_lea.vmem %s803_s10, 1024 }
  0x50   : > { %295 = vrot.lane.b32.xlu0 %v267_v4, %s901_s30  ;;  %310 = vrot.lane.b32.xlu1 %v262_v2, %s902_s27  ;;  %s644_s30 = sshll.u32 %s1059_s23, 5 }
  0x54   : > { %312 = vrot.lane.b32.xlu0 %v260_v0, %s902_s27  ;;  %323 = vrot.lane.b32.xlu1 %v259_v1, %s903_s26 }
  0x58   : > { %325 = vrot.lane.b32.xlu0 %v268_v3, %s903_s26  ;;  %336 = vrot.lane.b32.xlu1 %v262_v2, %s904_s11 }
  0x5c   : > { %338 = vrot.lane.b32.xlu0 %v260_v0, %s904_s11  ;;  %349 = vrot.lane.b32.xlu1 %v259_v1, %s905_s21 }
  0x60   : > { %351 = vrot.lane.b32.xlu0 %v268_v3, %s905_s21  ;;  %308 = vrot.lane.b32.xlu1 %v259_v1, %s902_s27  ;;  %s650_s27 = sshll.u32 %s880_s15, 2 }
  0x64   : > { %321 = vrot.lane.b32.xlu0 %v267_v4, %s903_s26  ;;  %334 = vrot.lane.b32.xlu1 %v259_v1, %s904_s11  ;;  %s651_s26 = sshll.u32 %s884_s16, 3 }
  0x65   : > { %s508_s11 = sadd.s32 %s651_s26, %s650_s27 }
  0x66   : > { %s652_s25 = sshll.u32 %s508_s11, 7 }
  0x67   : > { %s1095_s29 = scalar_lea.hbm %s1152_s3, %s652_s25 }
  0x68   : > { %347 = vrot.lane.b32.xlu0 %v267_v4, %s905_s21  ;;  %362 = vrot.lane.b32.xlu1 %v262_v2, %s906_s5  ;;  %s245_s21 = scalar_lea.vmem [#allocation6], %s644_s30 }
  0x6c   : > { %364 = vrot.lane.b32.xlu0 %v260_v0, %s906_s5  ;;  %360 = vrot.lane.b32.xlu1 %v259_v1, %s906_s5  ;;  %s511_s5 = sshll.u32 %s245_s21, 4  ;;  %s1090_s5 = int_to_ptr.vmem [resolvable:$true] %s511_s5 }
  0x6d   : > { %s798_s7 = scalar_lea.vmem %s1090_s5, 512  ;;  %p805_p6 = scmp.lt.s32.totalorder %s1090_s5, %s803_s10 }
  0x6e   : > { %p799_p8 = scmp.ne.s32.totalorder %s1090_s5, %s798_s7  ;;  %p806_p13 = scmp.lt.s32.totalorder %s804_s9, %s798_s7 }
  0x70   : > { %389 = vperm.xlu0 %763, %v385_v7   ;;  %394 = vperm.xlu1 %764, %v386_v8   ;;  %p800_p12 = pnand %p799_p8, %p1163_p9  ;;  %p807_p3 = por %p806_p13, %p805_p6 }
  0x72   : > { %p801_p0 = pneg %p800_p12 }
  0x74   : > { %p808_p5 = pnand %p807_p3, %p801_p0 }
  0xb2   : > { %v287_v9 = vpop.permute.xlu1 %286  ;;  %v272_v10 = vpop.permute.xlu0 %271 }
  0xb6   : > { %v298_v11 = vpop.permute.xlu0 %297  ;;  %v285_v12 = vpop.permute.xlu1 %284 }
  0xb7   : > { %v290_v13 = vsel %vm288_vm0, %v285_v12, %v287_v9 }
  0xb8   : > { %294 = vst [vmem:[#allocation2 + $0x18] sm:$0xf] %v290_v13 }
  0xba   : > { %v274_v14 = vpop.permute.xlu0 %273  ;;  %v300_v15 = vpop.permute.xlu1 %299 }
  0xbb   : > { %v277_v16 = vsel %vm275_vm1, %v272_v10, %v274_v14  ;;  %v303_v17 = vsel %vm301_vm2, %v298_v11, %v300_v15 }
  0xbc   : > { %281 = vst [vmem:[#allocation2 + $0x8] sm:$0xf0] %v277_v16  ;;  %307 = vst [vmem:[#allocation2 + $0x18] sm:$0xf0] %v303_v17 }
  0xbe   : > { %v270_v18 = vpop.permute.xlu0 %269  ;;  %v283_v19 = vpop.permute.xlu1 %282 }
  0xbf   : > { %v276_v20 = vsel %vm275_vm1, %v270_v18, %v272_v10  ;;  %v289_v21 = vsel %vm288_vm0, %v283_v19, %v285_v12 }
  0xc0   : > { %280 = vst [vmem:[#allocation2] sm:$0xf0] %v276_v20  ;;  %293 = vst [vmem:[#allocation2 + $0x10] sm:$0xf] %v289_v21 }
  0xc2   : > { %v296_v22 = vpop.permute.xlu0 %295  ;;  %v311_v23 = vpop.permute.xlu1 %310 }
  0xc3   : > { %v302_v24 = vsel %vm301_vm2, %v296_v22, %v298_v11  ;;  %v376_v25 = vld [vmem:[#allocation2 + $0x8] sm:$0xff]  ;;  %v378_v26 = vld [vmem:[#allocation2 + $0x18] sm:$0xff] }
  0xc4   : > { %306 = vst [vmem:[#allocation2 + $0x10] sm:$0xf0] %v302_v24  ;;  %v655_v27 = vpack.c.bf16 %v378_v26, %v376_v25 }
  0xc6   : > { %v313_v28 = vpop.permute.xlu0 %312  ;;  %v324_v29 = vpop.permute.xlu1 %323  ;;  %656 = vmatprep.subr.bf16.mxu0 %v655_v27  ;;  %663 = vmatprep.subr.bf16.mxu1 %v655_v27 }
  0xc7   : > { %v316_v30 = vsel %vm314_vm3, %v311_v23, %v313_v28  ;;  %v375_v34 = vld [vmem:[#allocation2] sm:$0xff] }
  0xc8   : > { %320 = vst [vmem:[#allocation2 + $0x28] sm:$0xf] %v316_v30 }
  0xca   : > { %v326_v31 = vpop.permute.xlu0 %325  ;;  %v337_v32 = vpop.permute.xlu1 %336 }
  0xcb   : > { %v329_v33 = vsel %vm327_vm4, %v324_v29, %v326_v31  ;;  %v377_v35 = vld [vmem:[#allocation2 + $0x10] sm:$0xff] }
  0xcc   : > { %333 = vst [vmem:[#allocation2 + $0x28] sm:$0xf0] %v329_v33  ;;  %v657_v36 = vpack.c.bf16 %v377_v35, %v375_v34 }
  0xce   : > { %v339_v37 = vpop.permute.xlu0 %338  ;;  %v350_v38 = vpop.permute.xlu1 %349  ;;  %658 = vmatpush1.bf16.msra.mxu0 %v657_v36  ;;  %666 = vmatpush1.bf16.msra.mxu1 %v657_v36 }
  0xcf   : > { %v342_v39 = vsel %vm340_vm5, %v337_v32, %v339_v37 }
  0xd0   : > { %346 = vst [vmem:[#allocation2 + $0x38] sm:$0xf] %v342_v39 }
  0xd2   : > { %v352_v40 = vpop.permute.xlu0 %351  ;;  %v309_v41 = vpop.permute.xlu1 %308 }
  0xd3   : > { %v355_v42 = vsel %vm353_vm6, %v350_v38, %v352_v40  ;;  %v315_v43 = vsel %vm314_vm3, %v309_v41, %v311_v23  ;;  %v380_v51 = vld [vmem:[#allocation2 + $0x28] sm:$0xff] }
  0xd4   : > { %359 = vst [vmem:[#allocation2 + $0x38] sm:$0xf0] %v355_v42  ;;  %319 = vst [vmem:[#allocation2 + $0x20] sm:$0xf] %v315_v43 }
  0xd6   : > { %v322_v44 = vpop.permute.xlu0 %321  ;;  %v335_v45 = vpop.permute.xlu1 %334 }
  0xd7   : > { %v328_v46 = vsel %vm327_vm4, %v322_v44, %v324_v29  ;;  %v341_v47 = vsel %vm340_vm5, %v335_v45, %v337_v32 }
  0xd8   : > { %332 = vst [vmem:[#allocation2 + $0x20] sm:$0xf0] %v328_v46  ;;  %345 = vst [vmem:[#allocation2 + $0x30] sm:$0xf] %v341_v47 }
  0xda   : > { %v348_v48 = vpop.permute.xlu0 %347  ;;  %v363_v49 = vpop.permute.xlu1 %362 }
  0xdb   : > { %v354_v50 = vsel %vm353_vm6, %v348_v48, %v350_v38  ;;  %v382_v52 = vld [vmem:[#allocation2 + $0x38] sm:$0xff] }
  0xdc   : > { %358 = vst [vmem:[#allocation2 + $0x30] sm:$0xf0] %v354_v50  ;;  %v659_v53 = vpack.c.bf16 %v382_v52, %v380_v51 }
  0xde   : > { %v365_v54 = vpop.permute.xlu0 %364  ;;  %v361_v55 = vpop.permute.xlu1 %360  ;;  %660 = vmatprep.subr.bf16.mxu0 %v659_v53  ;;  %664 = vmatprep.subr.bf16.mxu1 %v659_v53 }
  0xdf   : > { %v368_v56 = vsel %vm366_vm7, %v363_v49, %v365_v54  ;;  %v367_v57 = vsel %vm366_vm7, %v361_v55, %v363_v49  ;;  %v379_v58 = vld [vmem:[#allocation2 + $0x20] sm:$0xff] }
  0xe0   : > { %372 = vst [vmem:[#allocation2 + $0x48] sm:$0xf] %v368_v56  ;;  %371 = vst [vmem:[#allocation2 + $0x40] sm:$0xf] %v367_v57 }
  0xe3   : > { %v381_v59 = vld [vmem:[#allocation2 + $0x30] sm:$0xff] }
  0xe4   : > { %v661_v60 = vpack.c.bf16 %v381_v59, %v379_v58 }
  0xe6   : > { %662 = vmatpush1.bf16.msra.mxu0 %v661_v60  ;;  %667 = vmatpush1.bf16.msra.mxu1 %v661_v60 }
  0xe7   : > { %v384_v61 = vld [vmem:[#allocation2 + $0x48] sm:$0xf]  ;;  %v383_v0 = vld [vmem:[#allocation2 + $0x40] sm:$0xf] }
  0xe8   : > { %645 = vmatprep.subr.msk.mxu0 %vm404_vm8, %v384_v61  ;;  %665 = vmatprep.subr.msk.mxu1 %vm404_vm8, %v384_v61 }
  0xea   : > { %646 = vmatpush1.msk.msra.mxu0 %vm404_vm8, %v383_v0  ;;  %668 = vmatpush1.msk.msra.mxu1 %vm404_vm8, %v383_v0 }
  0xeb   : > { %647 = vmatmul.mubr.msk.f32.vlgmr.msra.gmra.mrb[0].mxu0 %vm397_vm9, %v373_v62  ;;  %648 = vmatmul.mubr.msk.f32.vlgmr.msra.gmra.mrb[0].mxu1 %vm397_vm9, %v374_v63 }
  0xef   : > { %v390_v1 = vpop.permute.xlu0 %389  ;;  %v395_v2 = vpop.permute.xlu1 %394 }
 0x1be   : > { %v477_v3 = vpop.f32.mrb[0].mxu0  ;;  %v483_v4 = vpop.f32.mrb[0].mxu1 }
 0x1bf   : > { %v478_v5 = vadd.f32 %v477_v3, %v390_v1  ;;  %v484_v6 = vadd.f32 %v483_v4, %v395_v2  ;;  %v479_v7 = vpop.f32.mrb[1].mxu0  ;;  %v485_v8 = vpop.f32.mrb[1].mxu1 }
 0x1c0   : > { %v480_v9 = vadd.f32 %v479_v7, %v390_v1  ;;  %v486_v10 = vadd.f32 %v485_v8, %v395_v2 }
 0x1c1   : > { %488 = vst [vmem:[%s245_s21] sm:$0xff] %v478_v5  ;;  %490 = vst [vmem:[%s245_s21 + $0x10] sm:$0xff] %v484_v6 }
 0x1c2   : > { %489 = vst [vmem:[%s245_s21 + $0x8] sm:$0xff] %v480_v9  ;;  %491 = vst [vmem:[%s245_s21 + $0x18] sm:$0xff] %v486_v10 }
 0x1c3   : > { %811 = shalt.err (!%p808_p5)
}
 0x1c4   : > { %s812_s20 = scalar_lea.hbm %s1095_s29, 512  ;;  %s816_s26 = scalar_lea.hbm %s1152_s3, 2048 }
 0x1c5   : > { %p813_p7 = scmp.ne.s32.totalorder %s1095_s29, %s812_s20  ;;  %p817_p1 = scmp.lt.u32.totalorder %s1095_s29, %s1152_s3 }
 0x1c6   : > { %p818_p2 = scmp.lt.u32.totalorder %s816_s26, %s812_s20  ;;  %p820_p8 = scmp.lt.u32.totalorder %s812_s20, %s1095_s29 }
 0x1c7   : > { %p814_p10 = pnand %p813_p7, %p1163_p9 }
 0x1c8   : > { %p819_p4 = por %p818_p2, %p817_p1 }
 0x1c9   : > { %p815_p11 = pneg %p814_p10 }
 0x1ca   : > { %p821_p12 = por %p820_p8, %p819_p4 }
 0x1cc   : > { %p822_p0 = pnand %p821_p12, %p815_p11 }
 0x1ce   : > { %825 = shalt.err (!%p822_p0)
}
 0x1cf   : > { %s910_s25 = smov 256   ;;  %s911_s15 = smov 16  }
 0x1d0   : > { %675 = dma.vmem_to_hbm [thread:$0]  (%p1163_p9), %s1090_s5, 512, %s1095_s29, %s493_s24, %s910_s25, %s910_s25, %s911_s15  }
 0x1d1 PF: > { %p686_p6 = scmp.ge.s32.totalorder %s896_s19, 2  ;;  %s526_s16 = sand.u32 1, %s868_s12  }
 0x1d2   : > { %p1164_p13 = scmp.ne.s32.totalorder %s1159_s4, 0  ;;  %s527_s7 = scalar_lea.sflag [#allocation5], %s526_s16 }
 0x1d4   : > { %p682_p3 = pnand %p686_p6, %p1164_p13 }
 0x1d6   : > { %863 = dma.done.wait (!%p682_p3), %s527_s7, 512  }
 0x1d7   : > { %865 = vsyncadd (!%p682_p3), %s527_s7, 4294966784  ;;  %s19_s19 = sadd.s32 1, %s896_s19   ;;  %s1165_s28 = sld [smem:[#allocation9_spill]] }
 0x1d8   : > { %p16_p5 = scmp.ge.s32.totalorder %s19_s19, 6   ;;  %s1166_s12 = smov %s872_s13 }
 0x1d9   : > { %s1167_s13 = smov %s876_s14  ;;  %s1168_s14 = smov %s1010_s6 }
 0x1da   : > { %s1169_s15 = smov %s888_s17  ;;  %s1170_s16 = smov %s892_s18 }
 0x1db   : > { %s1171_s17 = smov %s1174_s22  ;;  %18 = sbr.rel (!%p16_p5) target bundleno = 7 (0x7), region = 83 }
 0x1dd   : > { %s1172_s18 = smov %s1165_s28 }
 0x1e2   :  { %532 = vsyncpa [#allocation4], 1 }
 0x1e3   :  { %534 = vsyncpa [#allocation4 + $0x1], 1 }
 0x1e4   :  { %535 = vsyncpa [#allocation5], 1 }
 0x1e5   :  { %537 = vsyncpa [#allocation5 + $0x1], 1 }

</bundles_post_ra>
